<compile_context>
chip_gen: v7x
topology: tpu7x:2x2x1
jax: 0.10.0
libtpu: 0.0.40
codegen_flags: <defaults>
</compile_context>

<pallas_src>
import functools

import jax
import jax.numpy as jnp
import numpy as np
from jax.experimental import pallas as pl
from jax.experimental.pallas import tpu as pltpu


def _round_up(a: int, b: int) -> int:
    return (a + b - 1) // b * b


def _sublane_multiple(dtype) -> int:
    # Rows per packed sublane group: 8 for 4-byte, 16 for 2-byte, 32 for 1-byte.
    return max(8, 32 // jnp.dtype(dtype).itemsize)


def layernorm_kernel(x_ref, wb_ref, o_ref, *, eps: float):
    # (TM, H) stripe; compute in f32 regardless of storage dtype.
    x = x_ref[...].astype(jnp.float32)
    u = jnp.mean(x, axis=-1, keepdims=True)            # (TM, 1)
    xc = x - u
    s = jnp.mean(xc * xc, axis=-1, keepdims=True)      # biased variance (two-pass: robust)
    inv = jax.lax.rsqrt(s + eps)                       # EUP rsqrt, not a VPU divide
    w = wb_ref[0:1, :]                                 # (1, H) f32, resident
    b = wb_ref[1:2, :]
    o_ref[...] = (w * (xc * inv) + b).astype(o_ref.dtype)


def layer_norm(x, weight, bias, eps: float = 1e-12, block_rows: int = 1024):
    """LayerNorm over the last axis, matching the PyTorch module's forward."""
    H = x.shape[-1]
    x2 = x.reshape(-1, H)
    R = x2.shape[0]

    in_b = jnp.dtype(x.dtype).itemsize
    out_b = in_b
    sub = _sublane_multiple(x.dtype)

    # VMEM working set per stripe row: double-buffered input + output blocks
    # plus ~2 f32 staging copies materialized inside the kernel.
    per_row = H * (2 * in_b + 2 * out_b + 2 * 4)
    budget = 24 << 20                                  # fits every generation's scoped VMEM

    cap = max(sub, min(block_rows, budget // max(per_row, 1)))
    cap = max(sub, (cap // sub) * sub)
    # Prefer >= 2 grid stripes so v7x's two TensorCores both get work.
    if R >= 2 * sub:
        cap = min(cap, max(sub, ((R // 2) // sub) * sub))

    tm = None
    rows_padded = R
    if R % sub == 0:
        # Largest sublane-multiple divisor of R that fits the budget/cap.
        t = (min(cap, R) // sub) * sub
        while t >= sub:
            if R % t == 0:
                tm = t
                break
            t -= sub
    if tm is None:
        # Ragged row count: small enough -> one full-height block (block dim ==
        # array dim is exempt from the 8-sublane rule), still zero extra copies.
        if R <= sub or R * per_row <= budget:
            tm = R
        else:
            # Rare last resort: pad rows (costs one extra pass over x).
            tm = cap
            rows_padded = _round_up(R, tm)
            x2 = jnp.pad(x2, ((0, rows_padded - R), (0, 0)))

    grid = (rows_padded // tm,)

    # gamma/beta pre-cast to f32 once, packed into a single resident (2, H) block.
    wb = jnp.stack([weight.astype(jnp.float32), bias.astype(jnp.float32)], axis=0)

    footprint = tm * per_row + 2 * H * 4
    vmem_limit = int(min(max(footprint + (4 << 20), 32 << 20), 48 << 20))

    cost = pl.CostEstimate(
        flops=7 * rows_padded * H,                      # sub, sq, 2 means, 2 muls, add
        transcendentals=rows_padded,                    # one rsqrt per row
        bytes_accessed=rows_padded * H * (in_b + out_b) + 2 * H * 4,
    )

    out = pl.pallas_call(
        functools.partial(layernorm_kernel, eps=eps),
        out_shape=jax.ShapeDtypeStruct((rows_padded, H), x.dtype),
        grid_spec=pltpu.PrefetchScalarGridSpec(
            num_scalar_prefetch=0,
            grid=grid,
            in_specs=[
                pl.BlockSpec((tm, H), lambda i: (i, 0)),   # x stripe (pipelined)
                pl.BlockSpec((2, H), lambda i: (0, 0)),    # gamma/beta (resident, f32)
            ],
            out_specs=pl.BlockSpec((tm, H), lambda i: (i, 0)),
        ),
        compiler_params=pltpu.CompilerParams(
            dimension_semantics=("parallel",),             # rows independent -> v7x 2 TCs
            vmem_limit_bytes=vmem_limit,
        ),
        cost_estimate=cost,
    )(x2, wb)

    if rows_padded != R:
        out = out[:R]
    return out.reshape(x.shape)


def layer_norm_ref(x, weight, bias, eps: float = 1e-12):
    """Pure-JAX reference mirroring the PyTorch forward."""
    xf = x.astype(jnp.float32)
    u = jnp.mean(xf, axis=-1, keepdims=True)
    xc = xf - u
    s = jnp.mean(xc * xc, axis=-1, keepdims=True)
    y = xc / jnp.sqrt(s + eps)
    return (weight.astype(jnp.float32) * y + bias.astype(jnp.float32)).astype(x.dtype)


if __name__ == "__main__":
    key = jax.random.PRNGKey(0)
    k1, k2, k3 = jax.random.split(key, 3)

    B, S, H = 2, 8, 32
    x = jax.random.normal(k1, (B, S, H), dtype=jnp.float32)
    weight = 1.0 + 0.1 * jax.random.normal(k2, (H,), dtype=jnp.float32)
    bias = 0.1 * jax.random.normal(k3, (H,), dtype=jnp.float32)

    # f32 path: 16 flattened rows -> TM=8 (divides R), two grid stripes, no pad/slice.
    out = jax.block_until_ready(layer_norm(x, weight, bias))
    ref = jax.block_until_ready(layer_norm_ref(x, weight, bias))
    assert np.allclose(np.asarray(out), np.asarray(ref), rtol=1e-5, atol=1e-5), (
        np.max(np.abs(np.asarray(out) - np.asarray(ref))))

    # bf16 HBM storage, f32 compute (sublane multiple 16 -> one 16-row stripe).
    xb = x.astype(jnp.bfloat16)
    outb = jax.block_until_ready(layer_norm(xb, weight, bias))
    refb = layer_norm_ref(xb, weight, bias)
    assert np.allclose(np.asarray(outb, dtype=np.float32),
                       np.asarray(refb, dtype=np.float32),
                       rtol=2e-2, atol=2e-2)

    # Ragged row count (R=5, not a sublane multiple): single full-height block,
    # still zero pad/slice copies.
    xr = jax.random.normal(k1, (1, 5, H), dtype=jnp.float32)
    outr = jax.block_until_ready(layer_norm(xr, weight, bias))
    refr = layer_norm_ref(xr, weight, bias)
    assert np.allclose(np.asarray(outr), np.asarray(refr), rtol=1e-5, atol=1e-5)

    print("KERNEL_OK")
</pallas_src>

<mosaic_0001>
module attributes {stable_mosaic.version = 11 : i64} {
  func.func @layernorm_kernel(%arg0: i32, %arg1: memref<8x32xf32, #tpu.memory_space<vmem>>, %arg2: memref<2x32xf32, #tpu.memory_space<vmem>>, %arg3: memref<8x32xf32, #tpu.memory_space<vmem>>) attributes {dimension_semantics = [#tpu.dimension_semantics<parallel>], iteration_bounds = array<i64: 2>, scalar_prefetch = 0 : i64, scratch_operands = 0 : i64, tpu.core_type = #tpu.core_type<tc>, window_params = [{transform_indices = @transform_0, window_bounds = array<i64: 8, 32>}, {pipeline_mode = #tpu.pipeline_mode<synchronous>, transform_indices = @transform_1, window_bounds = array<i64: 2, 32>}, {transform_indices = @transform_2, window_bounds = array<i64: 8, 32>}]} {
    %c0 = arith.constant 0 : index
    %c0_0 = arith.constant 0 : index
    %0 = vector.load %arg1[%c0, %c0_0] : memref<8x32xf32, #tpu.memory_space<vmem>>, vector<8x32xf32>
    %cst = arith.constant dense<0.000000e+00> : vector<8xf32>
    %1 = vector.multi_reduction <add>, %0, %cst [1] : vector<8x32xf32> to vector<8xf32>
    %2 = vector.shape_cast %1 : vector<8xf32> to vector<8x1xf32>
    %cst_1 = arith.constant 3.200000e+01 : f32
    %3 = vector.broadcast %cst_1 : f32 to vector<8x1xf32>
    %4 = arith.divf %2, %3 : vector<8x1xf32>
    %5 = vector.broadcast %4 : vector<8x1xf32> to vector<8x32xf32>
    %6 = arith.subf %0, %5 : vector<8x32xf32>
    %7 = arith.mulf %6, %6 : vector<8x32xf32>
    %cst_2 = arith.constant dense<0.000000e+00> : vector<8xf32>
    %8 = vector.multi_reduction <add>, %7, %cst_2 [1] : vector<8x32xf32> to vector<8xf32>
    %9 = vector.shape_cast %8 : vector<8xf32> to vector<8x1xf32>
    %cst_3 = arith.constant 3.200000e+01 : f32
    %10 = vector.broadcast %cst_3 : f32 to vector<8x1xf32>
    %11 = arith.divf %9, %10 : vector<8x1xf32>
    %cst_4 = arith.constant 9.99999996E-13 : f32
    %12 = vector.broadcast %cst_4 : f32 to vector<8x1xf32>
    %13 = arith.addf %11, %12 : vector<8x1xf32>
    %14 = math.rsqrt %13 : vector<8x1xf32>
    %c0_5 = arith.constant 0 : index
    %c0_6 = arith.constant 0 : index
    %15 = vector.load %arg2[%c0_5, %c0_6] : memref<2x32xf32, #tpu.memory_space<vmem>>, vector<1x32xf32>
    %c1 = arith.constant 1 : index
    %c0_7 = arith.constant 0 : index
    %16 = vector.load %arg2[%c1, %c0_7] : memref<2x32xf32, #tpu.memory_space<vmem>>, vector<1x32xf32>
    %17 = vector.broadcast %14 : vector<8x1xf32> to vector<8x32xf32>
    %18 = arith.mulf %6, %17 : vector<8x32xf32>
    %19 = vector.broadcast %15 : vector<1x32xf32> to vector<8x32xf32>
    %20 = arith.mulf %19, %18 : vector<8x32xf32>
    %21 = vector.broadcast %16 : vector<1x32xf32> to vector<8x32xf32>
    %22 = arith.addf %20, %21 : vector<8x32xf32>
    %c0_8 = arith.constant 0 : index
    %c0_9 = arith.constant 0 : index
    %23 = vector.load %arg3[%c0_8, %c0_9] : memref<8x32xf32, #tpu.memory_space<vmem>>, vector<8x32xf32>
    tpu.vector_store %arg3[%c0_8, %c0_9], %22 {strides = array<i32>} : memref<8x32xf32, #tpu.memory_space<vmem>>, vector<8x32xf32>,
    return
  }
  func.func @transform_0(%arg0: i32) -> (i32, i32) {
    %c0_i32 = arith.constant 0 : i32
    %c0_i32_0 = arith.constant 0 : i32
    return %arg0, %c0_i32 : i32, i32
  }
  func.func @transform_1(%arg0: i32) -> (i32, i32) {
    %c0_i32 = arith.constant 0 : i32
    %c0_i32_0 = arith.constant 0 : i32
    %c0_i32_1 = arith.constant 0 : i32
    return %c0_i32, %c0_i32_0 : i32, i32
  }
  func.func @transform_2(%arg0: i32) -> (i32, i32) {
    %c0_i32 = arith.constant 0 : i32
    %c0_i32_0 = arith.constant 0 : i32
    return %arg0, %c0_i32 : i32, i32
  }
}

</mosaic_0001>

<bundles_post_ra>
// kernel: tpu_custom_call.1
= control target key start
LH: loop header
LB: loop body
LE: loop exit
PB: predicated region body
PF: predicated region fallthrough
CT: control target
= control target key end

     0   :  { %7 = vsyncpa [#allocation3], 0  ;;  %s619_s0 = inlined_call_operand.hbm [shape: f32[16,32], index: 0, kind: input, shape index: {}]   ;;  %s620_s1 = inlined_call_operand.vmem [shape: f32[2,32], index: 1, kind: input, shape index: {}]   ;;  %s621_s2 = inlined_call_operand.hbm [shape: f32[16,32], index: 2, kind: output, shape index: {}]  }
   0x1   :  { %9 = vsyncpa [#allocation3 + $0x1], 0 }
   0x2   :  { %10 = vsyncpa [#allocation4], 0 }
   0x3   :  { %12 = vsyncpa [#allocation4 + $0x1], 0  ;;  %s449_s9 = smov 0   ;;  %s451_s10 = smov 0  }
   0x4   :  { %s453_s11 = smov 0   ;;  %s455_s12 = smov 0  }
   0x5 LB: > { %s470_s13 = sadd.s32 4294967295, %s430_s12   ;;  %s272_s14 = sadd.s32 4294967294, %s430_s12   ;;  %s430_s12 = sphi %s455_s12, %s636_s12   ;;  %s426_s11 = sphi %s453_s11, %s635_s11   ;;  %s422_s10 = sphi %s451_s10, %s634_s10   ;;  %s418_s9 = sphi %s449_s9, %s633_s9  }
   0x6   : > { %s474_s15 = sadd.s32 1, %s430_s12   ;;  %s25_s16 = sadd.s32 1, %s426_s11 }
   0x7   : > { %s22_s17 = ssub.s32 %s430_s12, %s474_s15  ;;  %p32_p0 = scmp.ne.s32.totalorder %s426_s11, %s422_s10 }
   0x8   : > { %p23_p1 = scmp.eq.s32.totalorder %s22_s17, 0  ;;  %p33_p2 = scmp.eq.s32.totalorder %s430_s12, 0 }
   0x9   : > { %p38_p3 = scmp.ne.s32.totalorder %s422_s10, %s418_s9  ;;  %p39_p4 = scmp.eq.s32.totalorder %s470_s13, 0 }
   0xa   : > { %s486_s18 = scalar_select %p23_p1, %s426_s11, %s25_s16  }
   0xb   : > { %p488_p5 = por %p33_p2, %p32_p0  ;;  %p492_p6 = por %p39_p4, %p38_p3 }
   0xc   : > { %p83_p7 = scmp.eq.s32.totalorder %s470_s13, 1  ;;  %p89_p8 = scmp.eq.s32.totalorder %s272_s14, 1 }
   0xd   : > { %p298_p10 = scmp.lt.s32.totalorder %s430_s12, 2  ;;  %s112_s23 = sand.u32 1, %s426_s11  }
   0xe   : > { %p499_p11 = por %p83_p7, %p32_p0  ;;  %p503_p12 = por %p89_p8, %p38_p3 }
   0xf   : > { %s276_s24 = sshll.u32 %s430_s12, 7  ;;  %s275_s25 = sshll.u32 %s112_s23, 3 }
  0x10   : > { %s625_s21 = scalar_select %p499_p11, 1, 0 }
  0x11   : > { %s626_s22 = scalar_select %p503_p12, 1, 0 }
  0x12   : > { %s512_s28 = scalar_lea.hbm %s619_s0, %s276_s24  ;;  %s116_s29 = scalar_lea.vmem [#allocation2], %s275_s25 }
  0x13   : > { %s123_s30 = sshll.u32 %s116_s29, 4  ;;  %p516_p13 = pnand %p298_p10, %p488_p5  ;;  %s520_s30 = int_to_ptr.vmem [resolvable:$true] %s123_s30 }
  0x14   : > { %s113_s4 = scalar_lea.sflag [#allocation3], %s112_s23  ;;  %s334_s5 = scalar_lea.hbm %s512_s28, 128 }
  0x15   : > { %p335_p2 = scmp.ne.s32.totalorder %s512_s28, %s334_s5  ;;  %p336_p3 = pneg %p516_p13 }
  0x16   : > { %s339_s8 = scalar_lea.hbm %s619_s0, 256  ;;  %p340_p5 = scmp.lt.u32.totalorder %s512_s28, %s619_s0 }
  0x17   : > { %p337_p4 = pnand %p336_p3, %p335_p2  ;;  %p341_p8 = scmp.lt.u32.totalorder %s339_s8, %s334_s5 }
  0x18   : > { %p343_p9 = scmp.lt.u32.totalorder %s334_s5, %s512_s28 }
  0x19   : > { %p338_p7 = pneg %p337_p4  ;;  %p342_p10 = por %p341_p8, %p340_p5 }
  0x1b   : > { %p344_p0 = por %p343_p9, %p342_p10 }
  0x1d   : > { %p345_p1 = pnand %p344_p0, %p338_p7 }
  0x1f   : > { %348 = shalt.err (!%p345_p1)
}
  0x20   : > { %s349_s17 = scalar_lea.vmem %s520_s30, 128  ;;  %s432_s19 = smov [#allocation2]  }
  0x21   : > { %p350_p2 = scmp.ne.s32.totalorder %s520_s30, %s349_s17  ;;  %s354_s23 = sshll.u32 %s432_s19, 4  ;;  %s355_s23 = int_to_ptr.vmem [resolvable:$false] %s354_s23 }
  0x22   : > { %s356_s24 = scalar_lea.vmem %s355_s23, 256  ;;  %p357_p11 = scmp.lt.s32.totalorder %s520_s30, %s355_s23 }
  0x23   : > { %p352_p4 = pnand %p350_p2, %p336_p3  ;;  %p358_p5 = scmp.lt.s32.totalorder %s356_s24, %s349_s17 }
  0x25   : > { %p353_p12 = pneg %p352_p4  ;;  %p359_p8 = por %p358_p5, %p357_p11 }
  0x27   : > { %p360_p9 = pnand %p359_p8, %p353_p12 }
  0x29   : > { %363 = shalt.err (!%p360_p9)
}
  0x2a   : > { %293 = dma.hbm_to_vmem [thread:$0]  (!%p516_p13), %s512_s28, 128, %s520_s30, %s113_s4  }
  0x2b   : > { %p628_p0 = scmp.lt.s32.totalorder %s430_s12, 3  ;;  %p629_p1 = scmp.ge.s32.totalorder %s430_s12, 1 }
  0x2d   : > { %p129_p3 = pnand %p629_p1, %p628_p0 }
  0x2e   : > { %s554_s25 = sand.u32 (!%p129_p3), 1, %s422_s10  }
  0x2f   : > { %132 = sbr.rel (%p129_p3) target bundleno = 383 (0x17f), region = 28  ;;  %s278_s26 = sshll.u32 (!%p129_p3), %s554_s25, 3 }
  0x30   : > { %s135_s27 = scalar_lea.sflag (!%p129_p3), [#allocation3], %s554_s25  ;;  %s138_s29 = scalar_lea.vmem (!%p129_p3), [#allocation2], %s278_s26 }
  0x36   : > { %409 = dma.done.wait (%p492_p6), %s135_s27, 128  }
  0x37   : > { %411 = vsyncadd (%p492_p6), %s135_s27, 4294967168  ;;  %vm160_vm0 = vcmask 261120   ;;  %v159_v0 = vld [vmem:[%s138_s29] sm:$0xff]  ;;  %s283_s4 = sshll.u32 %s470_s13, 7  ;;  %s158_s5 = scalar_lea.vmem [#allocation5], %s278_s26 }
  0x38   : > { %v161_v1 = vsel %vm160_vm0, %v159_v0, 0.0  ;;  %v280_v11 = vld [vmem:[%s620_s1] ss:$0 sm:$0xff]  ;;  %v281_v13 = vld [vmem:[%s620_s1 + $0x1] ss:$0 sm:$0xff]  ;;  %s202_s6 = sshll.u32 %s158_s5, 4  ;;  %s574_s14 = scalar_lea.hbm %s621_s2, %s283_s4  ;;  %s576_s6 = int_to_ptr.vmem [resolvable:$true] %s202_s6 }
  0x39   : > { %162 = vadd.xlane.f32.xlu0 %v161_v1  ;;  %s189_s16 = scalar_lea.sflag [#allocation4], %s554_s25  ;;  %s364_s17 = scalar_lea.vmem %s576_s6, 128 }
  0x3a   : > { %p365_p6 = scmp.ne.s32.totalorder %s576_s6, %s364_s17  ;;  %p630_p11 = scmp.ne.s32.totalorder %s625_s21, 0 }
  0x3b   : > { %s433_s13 = smov [#allocation5]  }
  0x3c   : > { %p366_p12 = pnand %p365_p6, %p630_p11  ;;  %s368_s19 = sshll.u32 %s433_s13, 4  ;;  %s369_s19 = int_to_ptr.vmem [resolvable:$false] %s368_s19 }
  0x3d   : > { %s370_s23 = scalar_lea.vmem %s369_s19, 256  ;;  %p371_p7 = scmp.lt.s32.totalorder %s576_s6, %s369_s19 }
  0x3e   : > { %p367_p13 = pneg %p366_p12  ;;  %p372_p10 = scmp.lt.s32.totalorder %s370_s23, %s364_s17 }
  0x40   : > { %p373_p2 = por %p372_p10, %p371_p7 }
  0x42   : > { %p374_p4 = pnand %p373_p2, %p367_p13 }
  0xc6   : > { %v163_v2 = vpop.xlane.xlu0 %162 }
  0xc7   : > { %v165_v3 = vmul.f32 0.03125, %v163_v2 }
  0xc9   : > { %v166_v4 = vsub.f32 %v159_v0, %v165_v3 }
  0xcb   : > { %v167_v5 = vmul.f32 %v166_v4, %v166_v4 }
  0xcd   : > { %v168_v6 = vsel %vm160_vm0, %v167_v5, 0.0 }
  0xce   : > { %169 = vadd.xlane.f32.xlu0 %v168_v6 }
 0x15b   : > { %v170_v7 = vpop.xlane.xlu0 %169 }
 0x15c   : > { %v171_v8 = vmul.f32 0.03125, %v170_v7 }
 0x15e   : > { %v172_v9 = vadd.f32 1e-12, %v171_v8 }
 0x160   : > { %332 = vrsqrt.f32 %v172_v9 }
 0x16a   : > { %v333_v10 = vpop.eup %332 }
 0x16b   : > { %v176_v12 = vmul.f32 %v333_v10, %v166_v4 }
 0x16d   : > { %v181_v14 = vmul.f32 %v280_v11, %v176_v12 }
 0x16f   : > { %v186_v15 = vadd.f32 %v281_v13, %v181_v14 }
 0x171   : > { %187 = vst.msk [vmem:[%s158_s5] sm:$0xff] %vm160_vm0, %v186_v15 }
 0x172   : > { %377 = shalt.err (!%p374_p4)
}
 0x173   : > { %s378_s24 = scalar_lea.hbm %s574_s14, 128  ;;  %s382_s27 = scalar_lea.hbm %s621_s2, 256 }
 0x174   : > { %p379_p5 = scmp.ne.s32.totalorder %s574_s14, %s378_s24  ;;  %p383_p0 = scmp.lt.u32.totalorder %s574_s14, %s621_s2 }
 0x175   : > { %p384_p1 = scmp.lt.u32.totalorder %s382_s27, %s378_s24  ;;  %p386_p6 = scmp.lt.u32.totalorder %s378_s24, %s574_s14 }
 0x176   : > { %p380_p8 = pnand %p379_p5, %p630_p11 }
 0x177   : > { %p385_p3 = por %p384_p1, %p383_p0 }
 0x178   : > { %p381_p9 = pneg %p380_p8 }
 0x179   : > { %p387_p12 = por %p386_p6, %p385_p3 }
 0x17b   : > { %p388_p13 = pnand %p387_p12, %p381_p9 }
 0x17d   : > { %391 = shalt.err (!%p388_p13)
}
 0x17e   : > { %288 = dma.vmem_to_hbm [thread:$0]  (%p630_p11), %s576_s6, 128, %s574_s14, %s189_s16  }
 0x17f PF: > { %s214_s28 = sand.u32 1, %s418_s9   ;;  %p631_p7 = scmp.ne.s32.totalorder %s626_s22, 0 }
 0x180   : > { %p632_p10 = scmp.ge.s32.totalorder %s430_s12, 2  ;;  %s215_s30 = scalar_lea.sflag [#allocation4], %s214_s28 }
 0x182   : > { %p295_p2 = pnand %p632_p10, %p631_p7 }
 0x184   : > { %413 = dma.done.wait (!%p295_p2), %s215_s30, 128  }
 0x185   : > { %415 = vsyncadd (!%p295_p2), %s215_s30, 4294967168  ;;  %p15_p4 = scmp.ge.s32.totalorder %s474_s15, 4   ;;  %s633_s9 = smov %s422_s10 }
 0x186   : > { %s634_s10 = smov %s426_s11  ;;  %s635_s11 = smov %s486_s18 }
 0x187   : > { %s636_s12 = smov %s474_s15  ;;  %17 = sbr.rel (!%p15_p4) target bundleno = 5 (0x5), region = 73 }
 0x18e   :  { %220 = vsyncpa [#allocation3], 1 }
 0x18f   :  { %222 = vsyncpa [#allocation3 + $0x1], 1 }
 0x190   :  { %223 = vsyncpa [#allocation4], 1 }
 0x191   :  { %225 = vsyncpa [#allocation4 + $0x1], 1 }

</bundles_post_ra>
